<compile_context>
chip_gen: v7x
topology: tpu7x:2x2x1
jax: 0.10.0
libtpu: 0.0.40
codegen_flags: <defaults>
</compile_context>

<pallas_src>
import functools

import jax
import jax.numpy as jnp
from jax.experimental import pallas as pl
from jax.experimental.pallas import tpu as pltpu


_VMEM_LIMIT = 32 * 1024 * 1024     # safe scoped-VMEM request on v5e/v6e/v7x
_BLOCK_BUDGET = 4 * 1024 * 1024    # ~4 MiB per x block


# ------------------------------------------------------------------ kernels --

def _bn_stats_kernel(x_ref, mean_ref, var_ref, *, m):
    """Per-channel mean + unbiased variance, reduced over batch & spatial tiles.

    x_ref    : (1, TC, THW) block of the (N, C, HW) input
    mean_ref : (1, TC) lane-dense resident accumulator -> final mean
    var_ref  : (1, TC) lane-dense resident accumulator -> final unbiased var
    """
    n = pl.program_id(1)
    h = pl.program_id(2)
    first = jnp.logical_and(n == 0, h == 0)
    last = jnp.logical_and(n == pl.num_programs(1) - 1,
                           h == pl.num_programs(2) - 1)

    @pl.when(first)
    def _():
        mean_ref[...] = jnp.zeros_like(mean_ref)
        var_ref[...] = jnp.zeros_like(var_ref)

    x = x_ref[...].astype(jnp.float32)           # f32 accumulation
    mean_ref[...] += jnp.sum(x, axis=2)          # running per-channel sum
    var_ref[...] += jnp.sum(x * x, axis=2)       # running per-channel sum(x^2)

    @pl.when(last)
    def _():
        s = mean_ref[...]
        mu = s * (1.0 / m)
        mean_ref[...] = mu
        # unbiased variance (torch.var default): (sum(x^2) - sum(x)*mean)/(m-1)
        var_ref[...] = (var_ref[...] - s * mu) * (1.0 / (m - 1.0))


def _bn_norm_kernel(x_ref, scale_ref, shift_ref, out_ref):
    """out = x * scale + shift (2 VPU ops/element, per-channel scale/shift)."""
    x = x_ref[...]                                  # (1, TC, THW)
    scale = scale_ref[...].astype(x.dtype)[None]    # (TC, 1) -> (1, TC, 1)
    shift = shift_ref[...].astype(x.dtype)[None]
    out_ref[...] = (x * scale + shift).astype(out_ref.dtype)


# ----------------------------------------------------------------- wrappers --

def _pick_tiles(C, HW, itemsize, budget):
    """Pick (TC, THW): each of the last two block dims is either the full array
    dim or a multiple of 128 (hence of 8), sized to <= budget bytes when
    possible.  Prefer THW = HW (contiguous, lane-dense rows), then largest TC.
    """
    c_cands = [C] + sorted((d for d in range(128, C, 128) if C % d == 0),
                           reverse=True)
    hw_cands = [HW] + sorted((d for d in range(128, HW, 128) if HW % d == 0),
                             reverse=True)
    for thw in hw_cands:
        for tc in c_cands:
            if tc * thw * itemsize <= budget:
                return tc, thw
    return c_cands[-1], hw_cands[-1]   # fallback: smallest legal block


def _bn_stats_call(x3, tc, thw, m):
    N, C, HW = x3.shape
    kernel = functools.partial(_bn_stats_kernel, m=float(m))
    mean, var = pl.pallas_call(
        kernel,
        out_shape=(jax.ShapeDtypeStruct((1, C), jnp.float32),
                   jax.ShapeDtypeStruct((1, C), jnp.float32)),
        grid=(C // tc, N, HW // thw),
        in_specs=[pl.BlockSpec((1, tc, thw), lambda c, n, h: (n, c, h))],
        out_specs=(pl.BlockSpec((1, tc), lambda c, n, h: (0, c)),
                   pl.BlockSpec((1, tc), lambda c, n, h: (0, c))),
        compiler_params=pltpu.CompilerParams(
            dimension_semantics=("parallel", "arbitrary", "arbitrary"),
            vmem_limit_bytes=_VMEM_LIMIT),
    )(x3)
    return mean[0], var[0]


def _bn_norm_call(x3, scale, shift, tc, thw):
    N, C, HW = x3.shape
    return pl.pallas_call(
        _bn_norm_kernel,
        out_shape=jax.ShapeDtypeStruct((N, C, HW), x3.dtype),
        grid=(N, C // tc, HW // thw),
        in_specs=[
            pl.BlockSpec((1, tc, thw), lambda n, c, h: (n, c, h)),
            pl.BlockSpec((tc, 1), lambda n, c, h: (c, 0)),
            pl.BlockSpec((tc, 1), lambda n, c, h: (c, 0)),
        ],
        out_specs=pl.BlockSpec((1, tc, thw), lambda n, c, h: (n, c, h)),
        compiler_params=pltpu.CompilerParams(
            dimension_semantics=("parallel", "parallel", "parallel"),
            vmem_limit_bytes=_VMEM_LIMIT),
    )(x3, scale, shift)


class CustomBN2D:
    """JAX/Pallas equivalent of the PyTorch CustomBN2D forward."""

    def __init__(self, feat, eps=1e-5, momentum=0.1, block_budget=_BLOCK_BUDGET):
        self.feat = feat
        self.eps = float(eps)
        self.momentum = float(momentum)
        self.block_budget = int(block_budget)
        # torch.nn.init.ones_ / zeros_
        self.weight = jnp.ones((feat, 1, 1), dtype=jnp.float32)
        self.bias = jnp.zeros((feat, 1, 1), dtype=jnp.float32)
        self.running_mean = jnp.zeros((feat,), dtype=jnp.float32)
        self.running_var = jnp.ones((feat,), dtype=jnp.float32)
        self.training = True

    def __call__(self, xtuple):
        xmu, xvar, x, l, use_runstat = xtuple
        N, C, H, W = x.shape
        assert C == self.feat
        HW = H * W
        M = N * HW
        assert M > 1, "unbiased variance needs >1 element per channel"

        x3 = x.reshape(N, C, HW)                     # free reshape, no transpose
        tc, thw = _pick_tiles(C, HW, x.dtype.itemsize, self.block_budget)
        w = self.weight.reshape(C).astype(jnp.float32)
        b = self.bias.reshape(C).astype(jnp.float32)

        if self.training:
            mu, var = _bn_stats_call(x3, tc, thw, M)   # (C,), (C,) f32
            self.running_mean = ((1.0 - self.momentum) * self.running_mean
                                 + self.momentum * mu)
            self.running_var = ((1.0 - self.momentum) * self.running_var
                                + self.momentum * var)
            xmu = list(xmu) + [mu]
            xvar = list(xvar) + [var]
        elif use_runstat:
            mu, var = self.running_mean, self.running_var
        else:
            # TODO(synk): torch's else-branch unsqueezes stored stats at dim 2
            # (expects rank-2 per-sample stats); stored training stats are (C,),
            # so we broadcast the per-channel stats here.
            mu = jnp.asarray(xmu[l]).reshape(C)
            var = jnp.asarray(xvar[l]).reshape(C)

        # per-channel affine (O(C) glue): out = x * scale + shift
        inv = jax.lax.rsqrt(var.astype(jnp.float32) + self.eps)
        scale = w * inv
        shift = b - mu.astype(jnp.float32) * scale
        out3 = _bn_norm_call(x3, scale.reshape(C, 1), shift.reshape(C, 1),
                             tc, thw)
        out = out3.reshape(N, C, H, W)
        return (xmu, xvar, out, l + 1, use_runstat)


# --------------------------------------------------------------------- main --

def _ref_forward(x, eps):
    """Plain-JAX semantics of the torch training forward (weight=1, bias=0)."""
    C = x.shape[1]
    xt = jnp.transpose(x, (1, 0, 2, 3)).reshape(C, -1)
    mu = jnp.mean(xt, axis=1)
    var = jnp.var(xt, axis=1, ddof=1)          # torch.var default: unbiased
    out = ((x - mu[None, :, None, None])
           / jnp.sqrt(var[None, :, None, None] + eps))
    return mu, var, out


if __name__ == "__main__":
    key = jax.random.PRNGKey(0)
    N, C, H, W = 2, 4, 16, 16
    x = jax.random.normal(key, (N, C, H, W), dtype=jnp.float32) * 2.0 + 0.5

    bn = CustomBN2D(feat=C, eps=1e-5, momentum=0.1)

    # training-mode forward (module default)
    xmu, xvar, out, l, use_runstat = bn(([], [], x, 0, False))
    out = jax.block_until_ready(out)

    mu_ref, var_ref, ref = _ref_forward(x, 1e-5)
    assert jnp.allclose(out, ref, atol=1e-4, rtol=1e-4)
    assert jnp.allclose(xmu[0], mu_ref, atol=1e-4, rtol=1e-4)
    assert jnp.allclose(xvar[0], var_ref, atol=1e-4, rtol=1e-4)
    assert l == 1

    # eval / running-stats path
    bn.training = False
    _, _, out_eval, _, _ = bn((xmu, xvar, x, 0, True))
    jax.block_until_ready(out_eval)

    # eval / stored per-layer stats path (else branch)
    _, _, out_stored, _, _ = bn((xmu, xvar, x, 0, False))
    out_stored = jax.block_until_ready(out_stored)
    assert jnp.allclose(out_stored, ref, atol=1e-4, rtol=1e-4)

    # ---- exercise the channel-tiled path (TC < C) at small size -------------
    key2 = jax.random.PRNGKey(0)
    xc = jax.random.normal(key2, (2, 256, 8, 8), dtype=jnp.float32) * 1.5 - 0.25
    bn_c = CustomBN2D(feat=256, block_budget=32 * 1024)   # forces TC=128
    _, _, out_c, _, _ = bn_c(([], [], xc, 0, False))
    out_c = jax.block_until_ready(out_c)
    _, _, ref_c = _ref_forward(xc, 1e-5)
    assert jnp.allclose(out_c, ref_c, atol=2e-3, rtol=2e-3)

    # ---- exercise the spatial-tiled path (THW < HW) at small size -----------
    xs = jax.random.normal(key2, (2, 4, 32, 32), dtype=jnp.float32) * 0.7 + 1.0
    bn_s = CustomBN2D(feat=4, block_budget=8 * 1024)      # forces THW=512
    _, _, out_s, _, _ = bn_s(([], [], xs, 0, False))
    out_s = jax.block_until_ready(out_s)
    _, _, ref_s = _ref_forward(xs, 1e-5)
    assert jnp.allclose(out_s, ref_s, atol=2e-3, rtol=2e-3)

    print("KERNEL_OK")
</pallas_src>

<mosaic_0001>
module attributes {stable_mosaic.version = 11 : i64} {
  func.func @_bn_stats_kernel(%arg0: i32, %arg1: i32, %arg2: i32, %arg3: memref<1x4x256xf32, #tpu.memory_space<vmem>>, %arg4: memref<1x4xf32, #tpu.memory_space<vmem>>, %arg5: memref<1x4xf32, #tpu.memory_space<vmem>>) attributes {dimension_semantics = [#tpu.dimension_semantics<parallel>, #tpu.dimension_semantics<arbitrary>, #tpu.dimension_semantics<arbitrary>], iteration_bounds = array<i64: 1, 2, 1>, scalar_prefetch = 0 : i64, scratch_operands = 0 : i64, tpu.core_type = #tpu.core_type<tc>, window_params = [{transform_indices = @transform_0, window_bounds = array<i64: 1, 4, 256>}, {transform_indices = @transform_1, window_bounds = array<i64: 1, 4>}, {transform_indices = @transform_2, window_bounds = array<i64: 1, 4>}]} {
    %c0_i32 = arith.constant 0 : i32
    %0 = arith.cmpi eq, %arg1, %c0_i32 : i32
    %c0_i32_0 = arith.constant 0 : i32
    %1 = arith.cmpi eq, %arg2, %c0_i32_0 : i32
    %2 = arith.andi %0, %1 : i1
    %c1_i32 = arith.constant 1 : i32
    %3 = arith.cmpi eq, %arg1, %c1_i32 : i32
    %c0_i32_1 = arith.constant 0 : i32
    %4 = arith.cmpi eq, %arg2, %c0_i32_1 : i32
    %5 = arith.andi %3, %4 : i1
    %6 = arith.extui %2 : i1 to i32
    %c0_i32_2 = arith.constant 0 : i32
    %7 = arith.cmpi ne, %6, %c0_i32_2 : i32
    scf.if %7 {
      %cst_15 = arith.constant 0.000000e+00 : f32
      %20 = vector.broadcast %cst_15 : f32 to vector<1x4xf32>
      %c0_16 = arith.constant 0 : index
      %c0_17 = arith.constant 0 : index
      %21 = vector.load %arg4[%c0_16, %c0_17] : memref<1x4xf32, #tpu.memory_space<vmem>>, vector<1x4xf32>
      tpu.vector_store %arg4[%c0_16, %c0_17], %20 {strides = array<i32>} : memref<1x4xf32, #tpu.memory_space<vmem>>, vector<1x4xf32>,
      %cst_18 = arith.constant 0.000000e+00 : f32
      %22 = vector.broadcast %cst_18 : f32 to vector<1x4xf32>
      %c0_19 = arith.constant 0 : index
      %c0_20 = arith.constant 0 : index
      %23 = vector.load %arg5[%c0_19, %c0_20] : memref<1x4xf32, #tpu.memory_space<vmem>>, vector<1x4xf32>
      tpu.vector_store %arg5[%c0_19, %c0_20], %22 {strides = array<i32>} : memref<1x4xf32, #tpu.memory_space<vmem>>, vector<1x4xf32>,
    } else {
    }
    %c0 = arith.constant 0 : index
    %c0_3 = arith.constant 0 : index
    %c0_4 = arith.constant 0 : index
    %8 = vector.load %arg3[%c0, %c0_3, %c0_4] : memref<1x4x256xf32, #tpu.memory_space<vmem>>, vector<1x4x256xf32>
    %c0_5 = arith.constant 0 : index
    %c0_6 = arith.constant 0 : index
    %9 = vector.load %arg4[%c0_5, %c0_6] : memref<1x4xf32, #tpu.memory_space<vmem>>, vector<1x4xf32>
    %cst = arith.constant dense<0.000000e+00> : vector<1x4xf32>
    %10 = vector.multi_reduction <add>, %8, %cst [2] : vector<1x4x256xf32> to vector<1x4xf32>
    %11 = arith.addf %9, %10 : vector<1x4xf32>
    %c0_7 = arith.constant 0 : index
    %c0_8 = arith.constant 0 : index
    %12 = vector.load %arg4[%c0_7, %c0_8] : memref<1x4xf32, #tpu.memory_space<vmem>>, vector<1x4xf32>
    tpu.vector_store %arg4[%c0_7, %c0_8], %11 {strides = array<i32>} : memref<1x4xf32, #tpu.memory_space<vmem>>, vector<1x4xf32>,
    %c0_9 = arith.constant 0 : index
    %c0_10 = arith.constant 0 : index
    %13 = vector.load %arg5[%c0_9, %c0_10] : memref<1x4xf32, #tpu.memory_space<vmem>>, vector<1x4xf32>
    %14 = arith.mulf %8, %8 : vector<1x4x256xf32>
    %cst_11 = arith.constant dense<0.000000e+00> : vector<1x4xf32>
    %15 = vector.multi_reduction <add>, %14, %cst_11 [2] : vector<1x4x256xf32> to vector<1x4xf32>
    %16 = arith.addf %13, %15 : vector<1x4xf32>
    %c0_12 = arith.constant 0 : index
    %c0_13 = arith.constant 0 : index
    %17 = vector.load %arg5[%c0_12, %c0_13] : memref<1x4xf32, #tpu.memory_space<vmem>>, vector<1x4xf32>
    tpu.vector_store %arg5[%c0_12, %c0_13], %16 {strides = array<i32>} : memref<1x4xf32, #tpu.memory_space<vmem>>, vector<1x4xf32>,
    %18 = arith.extui %5 : i1 to i32
    %c0_i32_14 = arith.constant 0 : i32
    %19 = arith.cmpi ne, %18, %c0_i32_14 : i32
    scf.if %19 {
      %c0_15 = arith.constant 0 : index
      %c0_16 = arith.constant 0 : index
      %20 = vector.load %arg4[%c0_15, %c0_16] : memref<1x4xf32, #tpu.memory_space<vmem>>, vector<1x4xf32>
      %cst_17 = arith.constant 0.001953125 : f32
      %21 = vector.broadcast %cst_17 : f32 to vector<1x4xf32>
      %22 = arith.mulf %20, %21 : vector<1x4xf32>
      %c0_18 = arith.constant 0 : index
      %c0_19 = arith.constant 0 : index
      %23 = vector.load %arg4[%c0_18, %c0_19] : memref<1x4xf32, #tpu.memory_space<vmem>>, vector<1x4xf32>
      tpu.vector_store %arg4[%c0_18, %c0_19], %22 {strides = array<i32>} : memref<1x4xf32, #tpu.memory_space<vmem>>, vector<1x4xf32>,
      %c0_20 = arith.constant 0 : index
      %c0_21 = arith.constant 0 : index
      %24 = vector.load %arg5[%c0_20, %c0_21] : memref<1x4xf32, #tpu.memory_space<vmem>>, vector<1x4xf32>
      %25 = arith.mulf %20, %22 : vector<1x4xf32>
      %26 = arith.subf %24, %25 : vector<1x4xf32>
      %cst_22 = arith.constant 0.00195694715 : f32
      %27 = vector.broadcast %cst_22 : f32 to vector<1x4xf32>
      %28 = arith.mulf %26, %27 : vector<1x4xf32>
      %c0_23 = arith.constant 0 : index
      %c0_24 = arith.constant 0 : index
      %29 = vector.load %arg5[%c0_23, %c0_24] : memref<1x4xf32, #tpu.memory_space<vmem>>, vector<1x4xf32>
      tpu.vector_store %arg5[%c0_23, %c0_24], %28 {strides = array<i32>} : memref<1x4xf32, #tpu.memory_space<vmem>>, vector<1x4xf32>,
    } else {
    }
    return
  }
  func.func @transform_0(%arg0: i32, %arg1: i32, %arg2: i32) -> (i32, i32, i32) {
    %c0_i32 = arith.constant 0 : i32
    return %arg1, %arg0, %arg2 : i32, i32, i32
  }
  func.func @transform_1(%arg0: i32, %arg1: i32, %arg2: i32) -> (i32, i32) {
    %c0_i32 = arith.constant 0 : i32
    %c0_i32_0 = arith.constant 0 : i32
    return %c0_i32, %arg0 : i32, i32
  }
  func.func @transform_2(%arg0: i32, %arg1: i32, %arg2: i32) -> (i32, i32) {
    %c0_i32 = arith.constant 0 : i32
    %c0_i32_0 = arith.constant 0 : i32
    return %c0_i32, %arg0 : i32, i32
  }
}

</mosaic_0001>

<bundles_post_ra>
// kernel: tpu_custom_call.1
= control target key start
LH: loop header
LB: loop body
LE: loop exit
PB: predicated region body
PF: predicated region fallthrough
CT: control target
= control target key end

     0   :  { %8 = vsyncpa [#allocation3], 0  ;;  %s910_s0 = inlined_call_operand.hbm [shape: f32[2,4,256], index: 0, kind: input, shape index: {}]   ;;  %s911_s1 = inlined_call_operand.hbm [shape: f32[1,4], index: 1, kind: output, shape index: {0}]   ;;  %s912_s2 = inlined_call_operand.hbm [shape: f32[1,4], index: 2, kind: output, shape index: {1}]  }
   0x1   :  { %10 = vsyncpa [#allocation3 + $0x1], 0 }
   0x2   :  { %11 = vsyncpa [#allocation4], 0 }
   0x3   :  { %12 = vsyncpa [#allocation7], 0  ;;  %s722_s9 = smov 0   ;;  %s724_s10 = smov 0  }
   0x4   :  { %s726_s11 = smov 0   ;;  %s728_s12 = smov 0  }
   0x5   :  { %s730_s13 = smov 0   ;;  %s732_s14 = smov 0  }
   0x6 LB: > { %s465_s15 = sadd.s32 4294967295, %s699_s14   ;;  %s33_s16 = sadd.s32 1, %s695_s13  ;;  %s699_s14 = sphi %s732_s14, %s18_s14   ;;  %s695_s13 = sphi %s730_s13, %s923_s13   ;;  %s691_s12 = sphi %s728_s12, %s922_s12   ;;  %s687_s11 = sphi %s726_s11, %s921_s11   ;;  %s683_s10 = sphi %s724_s10, %s920_s10   ;;  %s679_s9 = sphi %s722_s9, %s919_s9  }
   0x7   : > { %p35_p0 = scmp.ge.s32.totalorder %s33_s16, 2  ;;  %s48_s17 = sadd.s32 1, %s687_s11 }
   0x8   : > { %p55_p1 = scmp.ne.s32.totalorder %s687_s11, %s683_s10  ;;  %p56_p2 = scmp.eq.s32.totalorder %s699_s14, 0 }
   0x9   : > { %s925_s16 = smov (%p35_p0, %s33_s16), 0  ;;  %p61_p4 = scmp.ne.s32.totalorder %s683_s10, %s679_s9 }
   0xa   : > { %p758_p3 = por %p56_p2, %p55_p1  ;;  %s41_s19 = ssub.s32 %s695_s13, %s925_s16 }
   0xb   : > { %p62_p5 = scmp.eq.s32.totalorder %s465_s15, 0  ;;  %p46_p6 = scmp.eq.s32.totalorder %s41_s19, 0 }
   0xc   : > { %p498_p8 = scmp.lt.s32.totalorder %s699_s14, 2  ;;  %s137_s22 = sand.u32 1, %s687_s11  }
   0xd   : > { %p767_p7 = por %p62_p5, %p61_p4  ;;  %s481_s23 = sshll.u32 %s695_s13, 7 }
   0xe   : > { %s773_s21 = scalar_select %p46_p6, %s687_s11, %s48_s17  }
   0xf   : > { %s468_s24 = sshll.u32 %s137_s22, 3  ;;  %s780_s27 = scalar_lea.hbm %s910_s0, %s481_s23 }
  0x10   : > { %s141_s28 = scalar_lea.vmem [#allocation2], %s468_s24  ;;  %p784_p9 = pnand %p498_p8, %p758_p3 }
  0x11   : > { %s153_s29 = sshll.u32 %s141_s28, 4  ;;  %s138_s3 = scalar_lea.sflag [#allocation3], %s137_s22  ;;  %s788_s29 = int_to_ptr.vmem [resolvable:$true] %s153_s29 }
  0x12   : > { %s559_s4 = scalar_lea.hbm %s780_s27, 128  ;;  %p561_p13 = pneg %p784_p9 }
  0x13   : > { %p560_p12 = scmp.ne.s32.totalorder %s780_s27, %s559_s4  ;;  %s564_s7 = scalar_lea.hbm %s910_s0, 256 }
  0x14   : > { %p565_p2 = scmp.lt.u32.totalorder %s780_s27, %s910_s0  ;;  %p566_p3 = scmp.lt.u32.totalorder %s564_s7, %s559_s4 }
  0x15   : > { %p562_p0 = pnand %p561_p13, %p560_p12  ;;  %p568_p5 = scmp.lt.u32.totalorder %s559_s4, %s780_s27 }
  0x16   : > { %p567_p4 = por %p566_p3, %p565_p2 }
  0x17   : > { %p563_p1 = pneg %p562_p0 }
  0x18   : > { %p569_p6 = por %p568_p5, %p567_p4 }
  0x1a   : > { %p570_p8 = pnand %p569_p6, %p563_p1 }
  0x1c   : > { %573 = shalt.err (!%p570_p8)
}
  0x1d   : > { %s574_s17 = scalar_lea.vmem %s788_s29, 128  ;;  %s701_s18 = smov [#allocation2]  }
  0x1e   : > { %p575_p12 = scmp.ne.s32.totalorder %s788_s29, %s574_s17  ;;  %s579_s19 = sshll.u32 %s701_s18, 4  ;;  %s580_s19 = int_to_ptr.vmem [resolvable:$false] %s579_s19 }
  0x1f   : > { %s581_s22 = scalar_lea.vmem %s580_s19, 256  ;;  %p582_p11 = scmp.lt.s32.totalorder %s788_s29, %s580_s19 }
  0x20   : > { %p577_p0 = pnand %p575_p12, %p561_p13  ;;  %p583_p2 = scmp.lt.s32.totalorder %s581_s22, %s574_s17 }
  0x22   : > { %p578_p10 = pneg %p577_p0  ;;  %p584_p3 = por %p583_p2, %p582_p11 }
  0x24   : > { %p585_p4 = pnand %p584_p3, %p578_p10 }
  0x26   : > { %588 = shalt.err (!%p585_p4)
}
  0x27   : > { %497 = dma.hbm_to_vmem [thread:$0]  (!%p784_p9), %s780_s27, 128, %s788_s29, %s138_s3  }
  0x28   : > { %p916_p1 = scmp.lt.s32.totalorder %s699_s14, 3  ;;  %p917_p5 = scmp.ge.s32.totalorder %s699_s14, 1 }
  0x2a   : > { %p159_p13 = pnand %p917_p5, %p916_p1 }
  0x2b   : > { %s164_s23 = sand.u32 (!%p159_p13), 1, %s683_s10  }
  0x2c   : > { %162 = sbr.rel (%p159_p13) target bundleno = 421 (0x1a5), region = 24  ;;  %s472_s24 = sshll.u32 (!%p159_p13), %s164_s23, 3 }
  0x2d   : > { %s165_s25 = scalar_lea.sflag (!%p159_p13), [#allocation3], %s164_s23  ;;  %s168_s26 = scalar_lea.vmem (!%p159_p13), [#allocation2], %s472_s24 }
  0x33   : > { %666 = dma.done.wait (%p767_p7), %s165_s25, 128  }
  0x34   : > { %668 = vsyncadd (%p767_p7), %s165_s25, 4294967168  ;;  %p185_p10 = scmp.eq.s32.totalorder %s691_s12, 0  ;;  %p189_p11 = scmp.eq.s32.totalorder %s691_s12, 1 }
  0x35   : > { %vm194_vm0 = vcmask (%p185_p10), 24576   ;;  %v702_v0 = vmov (%p185_p10), 0.0  }
  0x36   : > { %193 = sbr.rel (!%p185_p10) target bundleno = 61 (0x3d), region = 32  ;;  %195 = vst.msk [vmem:[#allocation5] sm:$0x1] (%p185_p10), %vm194_vm0, %v702_v0  ;;  %196 = vst.msk [vmem:[#allocation6] sm:$0x1] (%p185_p10), %vm194_vm0, %v702_v0 }
  0x3d PF: > { %v197_v1 = vld [vmem:[%s168_s26] sm:$0xff]  ;;  %vm202_vm1 = vcmask 1043456   ;;  %v703_v11 = vmov 0   ;;  %v209_v12 = vlaneseq  ;;  %v704_v16 = vmov 1966171168  }
  0x3e   : > { %v200_v2 = vcombine.high %v197_v1, %v197_v1  ;;  %v203_v3 = vsel %vm202_vm1, %v197_v1, 0.0  ;;  %v277_v4 = vmul.f32 %v197_v1, %v197_v1  ;;  %556 = vset.pattern.permute.xlu1 %v703_v11  ;;  %557 = vset.pattern.permute.xlu0 %v703_v11  ;;  %v228_v17 = vunpack.c.l.s4 %v704_v16  ;;  %v198_v49 = vld [vmem:[#allocation5] sm:$0x1]  ;;  %v276_v55 = vld [vmem:[#allocation6] sm:$0x1] }
  0x3f   : > { %v210_v13 = vshrl.u32 %v209_v12, 7  ;;  %v253_v14 = vand.u32 127, %v209_v12  ;;  %vm274_vm2 = vcmask 24576  }
  0x40   : > { %v204_v5 = vsel %vm202_vm1, %v200_v2, 0.0  ;;  %v279_v6 = vcombine.high %v277_v4, %v277_v4  ;;  %v281_v7 = vsel %vm202_vm1, %v277_v4, 0.0  ;;  %v229_v22 = vunpack.c.0.s8 %v228_v17 }
  0x41   : > { %v205_v8 = vadd.f32 %v204_v5, %v203_v3  ;;  %v256_v15 = vsub.s32 %v253_v14, %v210_v13  ;;  %v211_v18 = vsub.s32 0, %v210_v13  ;;  %v215_v19 = vsub.s32 1, %v210_v13 }
  0x42   : > { %v282_v9 = vsel %vm202_vm1, %v279_v6, 0.0  ;;  %v219_v20 = vsub.s32 2, %v210_v13  ;;  %v223_v21 = vsub.s32 3, %v210_v13  ;;  %v232_v28 = vsub.s32 %v229_v22, %v210_v13 }
  0x43   : > { %206 = vadd.xlane.f32.xlu0 %v205_v8  ;;  %v283_v10 = vadd.f32 %v282_v9, %v281_v7 }
  0x47   : > { %284 = vadd.xlane.f32.xlu0 %v283_v10 }
  0xd0   : > { %v207_v23 = vpop.xlane.xlu0 %206 }
  0xd1   : > { %v212_v24 = vrot.slane %v207_v23, %v211_v18  ;;  %v216_v25 = vrot.slane %v207_v23, %v215_v19  ;;  %v220_v26 = vrot.slane %v207_v23, %v219_v20  ;;  %v224_v27 = vrot.slane %v207_v23, %v223_v21 }
  0xd3   : > { %v225_v29 = vcombine.low %v212_v24, %v216_v25  ;;  %v226_v30 = vcombine.low %v220_v26, %v224_v27 }
  0xd4   : > { %v285_v31 = vpop.xlane.xlu0 %284 }
  0xd5   : > { %v290_v32 = vrot.slane %v285_v31, %v211_v18  ;;  %v294_v33 = vrot.slane %v285_v31, %v215_v19  ;;  %v298_v34 = vrot.slane %v285_v31, %v219_v20  ;;  %v302_v35 = vrot.slane %v285_v31, %v223_v21 }
  0xd6   : > { %v233_v36 = vrot.slane %v225_v29, %v232_v28  ;;  %v240_v37 = vrot.slane %v226_v30, %v232_v28 }
  0xd7   : > { %v303_v38 = vcombine.low %v290_v32, %v294_v33  ;;  %v304_v39 = vcombine.low %v298_v34, %v302_v35 }
  0xd8   : > { %v241_v40 = vcombine.low %v233_v36, %v240_v37 }
  0xd9   : > { %v311_v41 = vrot.slane %v303_v38, %v232_v28  ;;  %v318_v42 = vrot.slane %v304_v39, %v232_v28 }
  0xda   : > { %v248_v43 = vrot.slane %v241_v40, %v232_v28 }
  0xdb   : > { %v319_v44 = vcombine.low %v311_v41, %v318_v42 }
  0xdc   : > { %250 = vperm.xlu1 %556, %v248_v43  }
  0xdd   : > { %v326_v45 = vrot.slane %v319_v44, %v232_v28 }
  0xe0   : > { %328 = vperm.xlu1 %556, %v326_v45  }
 0x15b   : > { %v251_v46 = vpop.permute.xlu1 %250 }
 0x15c   : > { %v257_v47 = vrot.slane %v251_v46, %v256_v15 }
 0x15e   : > { %v264_v48 = vrot.slane %v257_v47, %v232_v28 }
 0x15f   : > { %v329_v50 = vpop.permute.xlu1 %328 }
 0x160   : > { %v271_v51 = vrot.slane %v264_v48, %v232_v28  ;;  %v333_v52 = vrot.slane %v329_v50, %v256_v15 }
 0x162   : > { %v273_v53 = vadd.f32 %v271_v51, %v198_v49  ;;  %v340_v54 = vrot.slane %v333_v52, %v232_v28  ;;  %352 = sbr.rel (!%p189_p11) target bundleno = 373 (0x175), region = 36 }
 0x164   : > { %275 = vst.msk [vmem:[#allocation5] sm:$0x1] %vm274_vm2, %v273_v53  ;;  %v347_v56 = vrot.slane %v340_v54, %v232_v28 }
 0x166   : > { %v349_v57 = vadd.f32 %v347_v56, %v276_v55 }
 0x168   : > { %350 = vst.msk [vmem:[#allocation6] sm:$0x1] %vm274_vm2, %v349_v57 }
 0x16b   : > { %v353_v58 = vld [vmem:[#allocation5] sm:$0x1] }
 0x16c   : > { %v354_v59 = vmul.f32 0.001953125, %v353_v58 }
 0x16e   : > { %355 = vst.msk [vmem:[#allocation5] sm:$0x1] %vm274_vm2, %v354_v59  ;;  %v357_v61 = vmul.f32 %v354_v59, %v353_v58 }
 0x16f   : > { %v356_v60 = vld [vmem:[#allocation6] sm:$0x1] }
 0x170   : > { %v358_v62 = vsub.f32 %v356_v60, %v357_v61 }
 0x172   : > { %v359_v63 = vmul.f32 0.0019569471, %v358_v62 }
 0x174   : > { %360 = vst.msk [vmem:[#allocation6] sm:$0x1] %vm274_vm2, %v359_v63 }
 0x175 PF: > { %p836_p7 = scmp.eq.s32.totalorder %s465_s15, 1  ;;  %s705_s12 = smov [#allocation5]  }
 0x176   : > { %s370_s27 = sshll.u32 %s705_s12, 4  ;;  %s706_s28 = smov [#allocation6]   ;;  %s371_s27 = int_to_ptr.vmem [resolvable:$true] %s370_s27 }
 0x177   : > { %s383_s29 = sshll.u32 %s706_s28, 4  ;;  %s589_s30 = scalar_lea.vmem %s371_s27, 16  ;;  %s840_s29 = int_to_ptr.vmem [resolvable:$true] %s383_s29 }
 0x178   : > { %p590_p9 = scmp.ne.s32.totalorder %s371_s27, %s589_s30  ;;  %s595_s3 = scalar_lea.vmem %s371_s27, 32 }
 0x179   : > { %p596_p12 = scmp.lt.s32.totalorder %s371_s27, %s371_s27  ;;  %p597_p0 = scmp.lt.s32.totalorder %s595_s3, %s589_s30 }
 0x17a   : > { %p591_p6 = pnand %p590_p9, %p836_p7 }
 0x17b   : > { %p598_p2 = por %p597_p0, %p596_p12 }
 0x17c   : > { %p592_p8 = pneg %p591_p6 }
 0x17e   : > { %p599_p3 = pnand %p598_p2, %p592_p8 }
 0x180   : > { %602 = shalt.err (!%p599_p3)
}
 0x181   : > { %s603_s5 = scalar_lea.hbm %s911_s1, 16 }
 0x182   : > { %p604_p4 = scmp.ne.s32.totalorder %s911_s1, %s603_s5  ;;  %p609_p13 = scmp.lt.u32.totalorder %s603_s5, %s911_s1 }
 0x184   : > { %p605_p1 = pnand %p604_p4, %p836_p7 }
 0x186   : > { %p606_p5 = pneg %p605_p1 }
 0x188   : > { %p611_p10 = pnand %p609_p13, %p606_p5 }
 0x18a   : > { %614 = shalt.err (!%p611_p10)
}
 0x18b   : > { %487 = dma.vmem_to_hbm [thread:$0]  (%p836_p7), %s371_s27, 16, %s911_s1, [#allocation4]  }
 0x18c   : > { %s615_s19 = scalar_lea.vmem %s840_s29, 16  ;;  %s621_s22 = scalar_lea.vmem %s840_s29, 32 }
 0x18d   : > { %p616_p11 = scmp.ne.s32.totalorder %s840_s29, %s615_s19  ;;  %p622_p8 = scmp.lt.s32.totalorder %s840_s29, %s840_s29 }
 0x18e   : > { %p623_p12 = scmp.lt.s32.totalorder %s621_s22, %s615_s19 }
 0x18f   : > { %p617_p9 = pnand %p616_p11, %p836_p7 }
 0x190   : > { %p624_p0 = por %p623_p12, %p622_p8 }
 0x191   : > { %p618_p6 = pneg %p617_p9 }
 0x193   : > { %p625_p2 = pnand %p624_p0, %p618_p6 }
 0x195   : > { %628 = shalt.err (!%p625_p2)
}
 0x196   : > { %s629_s25 = scalar_lea.hbm %s912_s2, 16 }
 0x197   : > { %p630_p3 = scmp.ne.s32.totalorder %s912_s2, %s629_s25  ;;  %p635_p5 = scmp.lt.u32.totalorder %s629_s25, %s912_s2 }
 0x199   : > { %p631_p4 = pnand %p630_p3, %p836_p7 }
 0x19b   : > { %p632_p1 = pneg %p631_p4 }
 0x19d   : > { %p637_p13 = pnand %p635_p5, %p632_p1 }
 0x19f   : > { %640 = shalt.err (!%p637_p13)
}
 0x1a0   : > { %489 = dma.vmem_to_hbm [thread:$0]  (%p836_p7), %s840_s29, 16, %s912_s2, [#allocation7]  }
 0x1a1   : > { %670 = dma.done.wait (%p836_p7), [#allocation4], 16  }
 0x1a2   : > { %672 = vsyncadd (%p836_p7), [#allocation4], 4294967280 }
 0x1a3   : > { %674 = dma.done.wait (%p836_p7), [#allocation7], 16  }
 0x1a4   : > { %676 = vsyncadd (%p836_p7), [#allocation7], 4294967280 }
 0x1a5 PF: > { %s18_s14 = sadd.s32 1, %s699_s14   ;;  %s919_s9 = smov %s683_s10 }
 0x1a6   : > { %p15_p10 = scmp.ge.s32.totalorder %s18_s14, 4   ;;  %s920_s10 = smov %s687_s11 }
 0x1a7   : > { %s921_s11 = smov %s773_s21  ;;  %s922_s12 = smov %s695_s13 }
 0x1a8   : > { %s923_s13 = smov %s925_s16  ;;  %17 = sbr.rel (!%p15_p10) target bundleno = 6 (0x6), region = 79 }
 0x1af   :  { %400 = vsyncpa [#allocation3], 1 }
 0x1b0   :  { %402 = vsyncpa [#allocation3 + $0x1], 1 }
 0x1b1   :  { %403 = vsyncpa [#allocation4], 1 }
 0x1b2   :  { %405 = vsyncpa [#allocation4 + $0x1], 1 }
 0x1b3   :  { %406 = vsyncpa [#allocation7], 1 }

</bundles_post_ra>
